<compile_context>
chip_gen: v5e
topology: v5e:2x2
jax: 0.10.0
libtpu: 0.0.40
codegen_flags: <defaults>
</compile_context>

<pallas_src>
import jax
import jax.numpy as jnp
from jax.experimental import pallas as pl
from jax.experimental.pallas import tpu as pltpu


def _round_up(x: int, m: int) -> int:
    return ((x + m - 1) // m) * m


def actor_kernel(x_ref, w1_ref, b1_ref, w2_ref, b2_ref,
                 w3_ref, b3_ref, w4_ref, b4_ref, o_ref):
    bf16 = jnp.bfloat16

    x = x_ref[...].astype(bf16)
    h = jnp.dot(x, w1_ref[...], preferred_element_type=jnp.float32) + b1_ref[...]
    h = jnp.maximum(h, 0.0)

    h = jnp.dot(h.astype(bf16), w2_ref[...],
                preferred_element_type=jnp.float32) + b2_ref[...]
    h = jnp.maximum(h, 0.0)

    h = jnp.dot(h.astype(bf16), w3_ref[...],
                preferred_element_type=jnp.float32) + b3_ref[...]
    h = jnp.maximum(h, 0.0)

    y = jnp.dot(h.astype(bf16), w4_ref[...],
                preferred_element_type=jnp.float32) + b4_ref[...]
    o_ref[...] = jnp.tanh(y).astype(o_ref.dtype)


def prepare_actor_params(params):
    """One-time conversion (do this at init / checkpoint load, NOT per call):
    weights -> bf16 MXU operands, biases -> f32 row vectors (1, out)."""
    prepped = {}
    for i in range(1, 5):
        prepped[f"w{i}"] = params[f"w{i}"].astype(jnp.bfloat16)
        prepped[f"b{i}"] = params[f"b{i}"].astype(jnp.float32).reshape(1, -1)
    return prepped


def _choose_tiles(B: int, block_b: int):
    """Pick a batch tile TB (multiple of 8 sublanes) and tile count.
    When there is meaningful work, make the tile count even and the tiles
    balanced so v7x's 2 TensorCores split the 'parallel' grid evenly."""
    n_tiles = max(1, -(-B // block_b))
    if B > 16:
        n_tiles = max(2, n_tiles)
        n_tiles += n_tiles % 2          # even count for 2-TC balance
    TB = _round_up(-(-B // n_tiles), 8)
    B_pad = TB * n_tiles
    return TB, n_tiles, B_pad


def actor_forward(state, prepped, *, block_b: int = 1024):
    """state: (B, state_dim) f32; prepped: output of prepare_actor_params."""
    B, state_dim = state.shape
    mid_dim = prepped["w1"].shape[1]
    action_dim = prepped["w4"].shape[1]

    TB, n_tiles, B_pad = _choose_tiles(B, block_b)

    x = state.astype(jnp.float32)
    if B_pad != B:                       # only pad the batch dim, and only if needed
        x = jnp.pad(x, ((0, B_pad - B), (0, 0)))

    # Constant index maps => weights/biases are DMA'd into VMEM once and stay
    # resident across the whole grid; only activation tiles are pipelined.
    const = lambda shape: pl.BlockSpec(shape, lambda i: (0, 0))

    # Cost estimate from the REAL (unpadded) dims.
    mac = state_dim * mid_dim + 2 * mid_dim * mid_dim + mid_dim * action_dim
    cost = pl.CostEstimate(
        flops=2 * B * mac,
        transcendentals=B * action_dim,
        bytes_accessed=(4 * B * state_dim + 4 * B * action_dim   # activations (f32)
                        + 2 * mac                                 # bf16 weights
                        + 4 * (3 * mid_dim + action_dim)))        # f32 biases

    out = pl.pallas_call(
        actor_kernel,
        out_shape=jax.ShapeDtypeStruct((B_pad, action_dim), jnp.float32),
        grid=(n_tiles,),
        in_specs=[
            pl.BlockSpec((TB, state_dim), lambda i: (i, 0)),   # batch-tiled input
            const((state_dim, mid_dim)), const((1, mid_dim)),
            const((mid_dim, mid_dim)),   const((1, mid_dim)),
            const((mid_dim, mid_dim)),   const((1, mid_dim)),
            const((mid_dim, action_dim)), const((1, action_dim)),
        ],
        out_specs=pl.BlockSpec((TB, action_dim), lambda i: (i, 0)),
        compiler_params=pltpu.CompilerParams(
            dimension_semantics=("parallel",)),
        cost_estimate=cost,
    )(x, prepped["w1"], prepped["b1"], prepped["w2"], prepped["b2"],
      prepped["w3"], prepped["b3"], prepped["w4"], prepped["b4"])

    if B_pad != B:
        out = out[:B]
    return out


def init_actor_params(key, state_dim, mid_dim, action_dim):
    """Deterministic synthetic init (PyTorch-style uniform bounds), f32."""
    dims = [(state_dim, mid_dim), (mid_dim, mid_dim),
            (mid_dim, mid_dim), (mid_dim, action_dim)]
    params = {}
    keys = jax.random.split(key, 2 * len(dims))
    for i, (fan_in, fan_out) in enumerate(dims):
        bound = 1.0 / jnp.sqrt(jnp.float32(fan_in))
        params[f"w{i+1}"] = jax.random.uniform(
            keys[2 * i], (fan_in, fan_out), minval=-bound, maxval=bound,
            dtype=jnp.float32)
        params[f"b{i+1}"] = jax.random.uniform(
            keys[2 * i + 1], (1, fan_out), minval=-bound, maxval=bound,
            dtype=jnp.float32)
    return params


def _reference_bf16(state, prepped):
    """Matches the kernel's math exactly: bf16 MXU operands, f32 accumulation,
    f32 bias/ReLU/tanh."""
    bf16 = jnp.bfloat16
    h = jnp.dot(state.astype(bf16), prepped["w1"],
                preferred_element_type=jnp.float32) + prepped["b1"]
    h = jnp.maximum(h, 0.0)
    h = jnp.dot(h.astype(bf16), prepped["w2"],
                preferred_element_type=jnp.float32) + prepped["b2"]
    h = jnp.maximum(h, 0.0)
    h = jnp.dot(h.astype(bf16), prepped["w3"],
                preferred_element_type=jnp.float32) + prepped["b3"]
    h = jnp.maximum(h, 0.0)
    y = jnp.dot(h.astype(bf16), prepped["w4"],
                preferred_element_type=jnp.float32) + prepped["b4"]
    return jnp.tanh(y)


def _reference_f32(state, params):
    hp = jax.lax.Precision.HIGHEST
    h = jnp.maximum(jnp.dot(state, params["w1"], precision=hp) + params["b1"], 0.0)
    h = jnp.maximum(jnp.dot(h, params["w2"], precision=hp) + params["b2"], 0.0)
    h = jnp.maximum(jnp.dot(h, params["w3"], precision=hp) + params["b3"], 0.0)
    return jnp.tanh(jnp.dot(h, params["w4"], precision=hp) + params["b4"])


if __name__ == "__main__":
    key = jax.random.PRNGKey(0)
    state_dim = 8
    mid_dim = 32
    action_dim = 4

    pkey, skey1, skey2 = jax.random.split(key, 3)
    params = init_actor_params(pkey, state_dim, mid_dim, action_dim)
    prepped = prepare_actor_params(params)   # one-time, outside the hot path

    # Small demo batch (single grid step).
    state_small = jax.random.normal(skey1, (2, state_dim), dtype=jnp.float32)
    out_small = actor_forward(state_small, prepped)
    jax.block_until_ready(out_small)
    assert out_small.shape == (2, action_dim)
    assert jnp.allclose(out_small, _reference_bf16(state_small, prepped), atol=1e-4), \
        "mismatch vs bf16-matched reference (small batch)"
    assert jnp.allclose(out_small, _reference_f32(state_small, params), atol=1e-1), \
        "mismatch vs f32 reference (small batch)"

    # Larger, non-aligned batch: two balanced 'parallel' tiles (152 rows each).
    state_big = jax.random.normal(skey2, (300, state_dim), dtype=jnp.float32)
    out_big = actor_forward(state_big, prepped, block_b=1024)
    jax.block_until_ready(out_big)
    assert out_big.shape == (300, action_dim)
    assert jnp.allclose(out_big, _reference_bf16(state_big, prepped), atol=1e-4), \
        "mismatch vs bf16-matched reference (tiled batch)"
    assert jnp.allclose(out_big, _reference_f32(state_big, params), atol=1e-1), \
        "mismatch vs f32 reference (tiled batch)"

    # TODO(synk): Actor.get_action (gaussian noise + clamp) is not part of
    # forward(); it could be fused in-kernel with pltpu.prng_seed /
    # pltpu.stateful_normal if needed.
    print("KERNEL_OK")
</pallas_src>

<mosaic_0001>
module attributes {stable_mosaic.version = 11 : i64} {
  func.func @actor_kernel(%arg0: i32, %arg1: memref<8x8xf32, #tpu.memory_space<vmem>>, %arg2: memref<8x32xbf16, #tpu.memory_space<vmem>>, %arg3: memref<1x32xf32, #tpu.memory_space<vmem>>, %arg4: memref<32x32xbf16, #tpu.memory_space<vmem>>, %arg5: memref<1x32xf32, #tpu.memory_space<vmem>>, %arg6: memref<32x32xbf16, #tpu.memory_space<vmem>>, %arg7: memref<1x32xf32, #tpu.memory_space<vmem>>, %arg8: memref<32x4xbf16, #tpu.memory_space<vmem>>, %arg9: memref<1x4xf32, #tpu.memory_space<vmem>>, %arg10: memref<8x4xf32, #tpu.memory_space<vmem>>) attributes {dimension_semantics = [#tpu.dimension_semantics<parallel>], iteration_bounds = array<i64: 1>, scalar_prefetch = 0 : i64, scratch_operands = 0 : i64, tpu.core_type = #tpu.core_type<tc>, window_params = [{transform_indices = @transform_0, window_bounds = array<i64: 8, 8>}, {pipeline_mode = #tpu.pipeline_mode<synchronous>, transform_indices = @transform_1, window_bounds = array<i64: 8, 32>}, {pipeline_mode = #tpu.pipeline_mode<synchronous>, transform_indices = @transform_2, window_bounds = array<i64: 1, 32>}, {pipeline_mode = #tpu.pipeline_mode<synchronous>, transform_indices = @transform_3, window_bounds = array<i64: 32, 32>}, {pipeline_mode = #tpu.pipeline_mode<synchronous>, transform_indices = @transform_4, window_bounds = array<i64: 1, 32>}, {pipeline_mode = #tpu.pipeline_mode<synchronous>, transform_indices = @transform_5, window_bounds = array<i64: 32, 32>}, {pipeline_mode = #tpu.pipeline_mode<synchronous>, transform_indices = @transform_6, window_bounds = array<i64: 1, 32>}, {pipeline_mode = #tpu.pipeline_mode<synchronous>, transform_indices = @transform_7, window_bounds = array<i64: 32, 4>}, {pipeline_mode = #tpu.pipeline_mode<synchronous>, transform_indices = @transform_8, window_bounds = array<i64: 1, 4>}, {transform_indices = @transform_9, window_bounds = array<i64: 8, 4>}]} {
    %c0 = arith.constant 0 : index
    %c0_0 = arith.constant 0 : index
    %0 = vector.load %arg1[%c0, %c0_0] : memref<8x8xf32, #tpu.memory_space<vmem>>, vector<8x8xf32>
    %1 = arith.truncf %0 : vector<8x8xf32> to vector<8x8xbf16>
    %c0_1 = arith.constant 0 : index
    %c0_2 = arith.constant 0 : index
    %2 = vector.load %arg2[%c0_1, %c0_2] : memref<8x32xbf16, #tpu.memory_space<vmem>>, vector<8x32xbf16>
    %cst = arith.constant dense<0.000000e+00> : vector<8x32xf32>
    %3 = tpu.matmul %1, %2, %cst {dimension_numbers = #tpu.dot_dimension_numbers<[1], [0], [0], [1], [0, 0, 1, 1], [], []>} : vector<8x8xbf16>, vector<8x32xbf16>, vector<8x32xf32> -> vector<8x32xf32>
    %c0_3 = arith.constant 0 : index
    %c0_4 = arith.constant 0 : index
    %4 = vector.load %arg3[%c0_3, %c0_4] : memref<1x32xf32, #tpu.memory_space<vmem>>, vector<1x32xf32>
    %5 = vector.broadcast %4 : vector<1x32xf32> to vector<8x32xf32>
    %6 = arith.addf %3, %5 : vector<8x32xf32>
    %cst_5 = arith.constant 0.000000e+00 : f32
    %7 = vector.broadcast %cst_5 : f32 to vector<8x32xf32>
    %8 = arith.maximumf %6, %7 : vector<8x32xf32>
    %9 = arith.truncf %8 : vector<8x32xf32> to vector<8x32xbf16>
    %c0_6 = arith.constant 0 : index
    %c0_7 = arith.constant 0 : index
    %10 = vector.load %arg4[%c0_6, %c0_7] : memref<32x32xbf16, #tpu.memory_space<vmem>>, vector<32x32xbf16>
    %cst_8 = arith.constant dense<0.000000e+00> : vector<8x32xf32>
    %11 = tpu.matmul %9, %10, %cst_8 {dimension_numbers = #tpu.dot_dimension_numbers<[1], [0], [0], [1], [0, 0, 1, 1], [], []>} : vector<8x32xbf16>, vector<32x32xbf16>, vector<8x32xf32> -> vector<8x32xf32>
    %c0_9 = arith.constant 0 : index
    %c0_10 = arith.constant 0 : index
    %12 = vector.load %arg5[%c0_9, %c0_10] : memref<1x32xf32, #tpu.memory_space<vmem>>, vector<1x32xf32>
    %13 = vector.broadcast %12 : vector<1x32xf32> to vector<8x32xf32>
    %14 = arith.addf %11, %13 : vector<8x32xf32>
    %cst_11 = arith.constant 0.000000e+00 : f32
    %15 = vector.broadcast %cst_11 : f32 to vector<8x32xf32>
    %16 = arith.maximumf %14, %15 : vector<8x32xf32>
    %17 = arith.truncf %16 : vector<8x32xf32> to vector<8x32xbf16>
    %c0_12 = arith.constant 0 : index
    %c0_13 = arith.constant 0 : index
    %18 = vector.load %arg6[%c0_12, %c0_13] : memref<32x32xbf16, #tpu.memory_space<vmem>>, vector<32x32xbf16>
    %cst_14 = arith.constant dense<0.000000e+00> : vector<8x32xf32>
    %19 = tpu.matmul %17, %18, %cst_14 {dimension_numbers = #tpu.dot_dimension_numbers<[1], [0], [0], [1], [0, 0, 1, 1], [], []>} : vector<8x32xbf16>, vector<32x32xbf16>, vector<8x32xf32> -> vector<8x32xf32>
    %c0_15 = arith.constant 0 : index
    %c0_16 = arith.constant 0 : index
    %20 = vector.load %arg7[%c0_15, %c0_16] : memref<1x32xf32, #tpu.memory_space<vmem>>, vector<1x32xf32>
    %21 = vector.broadcast %20 : vector<1x32xf32> to vector<8x32xf32>
    %22 = arith.addf %19, %21 : vector<8x32xf32>
    %cst_17 = arith.constant 0.000000e+00 : f32
    %23 = vector.broadcast %cst_17 : f32 to vector<8x32xf32>
    %24 = arith.maximumf %22, %23 : vector<8x32xf32>
    %25 = arith.truncf %24 : vector<8x32xf32> to vector<8x32xbf16>
    %c0_18 = arith.constant 0 : index
    %c0_19 = arith.constant 0 : index
    %26 = vector.load %arg8[%c0_18, %c0_19] : memref<32x4xbf16, #tpu.memory_space<vmem>>, vector<32x4xbf16>
    %cst_20 = arith.constant dense<0.000000e+00> : vector<8x4xf32>
    %27 = tpu.matmul %25, %26, %cst_20 {dimension_numbers = #tpu.dot_dimension_numbers<[1], [0], [0], [1], [0, 0, 1, 1], [], []>} : vector<8x32xbf16>, vector<32x4xbf16>, vector<8x4xf32> -> vector<8x4xf32>
    %c0_21 = arith.constant 0 : index
    %c0_22 = arith.constant 0 : index
    %28 = vector.load %arg9[%c0_21, %c0_22] : memref<1x4xf32, #tpu.memory_space<vmem>>, vector<1x4xf32>
    %29 = vector.broadcast %28 : vector<1x4xf32> to vector<8x4xf32>
    %30 = arith.addf %27, %29 : vector<8x4xf32>
    %31 = math.tanh %30 : vector<8x4xf32>
    %c0_23 = arith.constant 0 : index
    %c0_24 = arith.constant 0 : index
    %32 = vector.load %arg10[%c0_23, %c0_24] : memref<8x4xf32, #tpu.memory_space<vmem>>, vector<8x4xf32>
    tpu.vector_store %arg10[%c0_23, %c0_24], %31 {strides = array<i32>} : memref<8x4xf32, #tpu.memory_space<vmem>>, vector<8x4xf32>,
    return
  }
  func.func @transform_0(%arg0: i32) -> (i32, i32) {
    %c0_i32 = arith.constant 0 : i32
    %c0_i32_0 = arith.constant 0 : i32
    return %arg0, %c0_i32 : i32, i32
  }
  func.func @transform_1(%arg0: i32) -> (i32, i32) {
    %c0_i32 = arith.constant 0 : i32
    %c0_i32_0 = arith.constant 0 : i32
    %c0_i32_1 = arith.constant 0 : i32
    return %c0_i32, %c0_i32_0 : i32, i32
  }
  func.func @transform_2(%arg0: i32) -> (i32, i32) {
    %c0_i32 = arith.constant 0 : i32
    %c0_i32_0 = arith.constant 0 : i32
    %c0_i32_1 = arith.constant 0 : i32
    return %c0_i32, %c0_i32_0 : i32, i32
  }
  func.func @transform_3(%arg0: i32) -> (i32, i32) {
    %c0_i32 = arith.constant 0 : i32
    %c0_i32_0 = arith.constant 0 : i32
    %c0_i32_1 = arith.constant 0 : i32
    return %c0_i32, %c0_i32_0 : i32, i32
  }
  func.func @transform_4(%arg0: i32) -> (i32, i32) {
    %c0_i32 = arith.constant 0 : i32
    %c0_i32_0 = arith.constant 0 : i32
    %c0_i32_1 = arith.constant 0 : i32
    return %c0_i32, %c0_i32_0 : i32, i32
  }
  func.func @transform_5(%arg0: i32) -> (i32, i32) {
    %c0_i32 = arith.constant 0 : i32
    %c0_i32_0 = arith.constant 0 : i32
    %c0_i32_1 = arith.constant 0 : i32
    return %c0_i32, %c0_i32_0 : i32, i32
  }
  func.func @transform_6(%arg0: i32) -> (i32, i32) {
    %c0_i32 = arith.constant 0 : i32
    %c0_i32_0 = arith.constant 0 : i32
    %c0_i32_1 = arith.constant 0 : i32
    return %c0_i32, %c0_i32_0 : i32, i32
  }
  func.func @transform_7(%arg0: i32) -> (i32, i32) {
    %c0_i32 = arith.constant 0 : i32
    %c0_i32_0 = arith.constant 0 : i32
    %c0_i32_1 = arith.constant 0 : i32
    return %c0_i32, %c0_i32_0 : i32, i32
  }
  func.func @transform_8(%arg0: i32) -> (i32, i32) {
    %c0_i32 = arith.constant 0 : i32
    %c0_i32_0 = arith.constant 0 : i32
    %c0_i32_1 = arith.constant 0 : i32
    return %c0_i32, %c0_i32_0 : i32, i32
  }
  func.func @transform_9(%arg0: i32) -> (i32, i32) {
    %c0_i32 = arith.constant 0 : i32
    %c0_i32_0 = arith.constant 0 : i32
    return %arg0, %c0_i32 : i32, i32
  }
}

</mosaic_0001>

<bundles_post_ra>
// kernel: tpu_custom_call.1
= control target key start
LH: loop header
LB: loop body
LE: loop exit
PB: predicated region body
PF: predicated region fallthrough
CT: control target
= control target key end

     0   :  { %14 = vsyncpa [#allocation3], 0  ;;  %s486_s0 = inlined_call_operand.hbm [shape: f32[8,8], index: 0, kind: input, shape index: {}]   ;;  %s487_s1 = inlined_call_operand.vmem [shape: bf16[8,32], index: 1, kind: input, shape index: {}]   ;;  %s488_s2 = inlined_call_operand.hbm [shape: f32[1,32], index: 2, kind: input, shape index: {}]   ;;  %s489_s3 = inlined_call_operand.vmem [shape: bf16[32,32], index: 3, kind: input, shape index: {}]   ;;  %s490_s4 = inlined_call_operand.hbm [shape: f32[1,32], index: 4, kind: input, shape index: {}]   ;;  %s491_s5 = inlined_call_operand.hbm [shape: bf16[32,32], index: 5, kind: input, shape index: {}]   ;;  %s492_s6 = inlined_call_operand.vmem [shape: f32[1,32], index: 6, kind: input, shape index: {}]   ;;  %s493_s7 = inlined_call_operand.vmem [shape: bf16[32,4], index: 7, kind: input, shape index: {}]   ;;  %s494_s8 = inlined_call_operand.vmem [shape: f32[1,4], index: 8, kind: input, shape index: {}]   ;;  %s495_s9 = inlined_call_operand.vmem [shape: f32[8,4], index: 9, kind: output, shape index: {}]  }
   0x1   :  { %15 = vsyncpa [#allocation5], 0  ;;  %s35_s11 = sshll.u32 %s488_s2, 4  ;;  %s36_s11 = int_to_ptr.hbm [resolvable:$true] %s35_s11 }
   0x2   :  { %16 = vsyncpa [#allocation8], 0  ;;  %s391_s12 = smov [#allocation4]   ;;  %s22_s16 = sshll.u32 %s486_s0, 4  ;;  %s23_s16 = int_to_ptr.hbm [resolvable:$true] %s22_s16 }
   0x3   :  { %s37_s13 = sshll.u32 %s391_s12, 4  ;;  %s392_s17 = smov [#allocation2]   ;;  %s38_s13 = int_to_ptr.vmem [resolvable:$true] %s37_s13 }
   0x4   :  { %40 = dma.hbm_to_vmem [thread:$0]  %s36_s11, 16, %s38_s13, [#allocation5]  }
   0x5   :  { %s24_s18 = sshll.u32 %s392_s17, 4  ;;  %s48_s21 = sshll.u32 %s490_s4, 4  ;;  %s25_s18 = int_to_ptr.vmem [resolvable:$true] %s24_s18  ;;  %s49_s21 = int_to_ptr.hbm [resolvable:$true] %s48_s21 }
   0x6   :  { %27 = dma.hbm_to_vmem [thread:$0]  %s23_s16, 128, %s25_s18, [#allocation3]  }
   0x7   :  { %s58_s23 = sshll.u32 %s491_s5, 4  ;;  %s393_s24 = smov [#allocation6]   ;;  %s59_s23 = int_to_ptr.hbm [resolvable:$true] %s58_s23 }
   0x8   :  { %s50_s25 = sshll.u32 %s393_s24, 4  ;;  %s394_s0 = smov [#allocation7]   ;;  %s51_s25 = int_to_ptr.vmem [resolvable:$true] %s50_s25 }
   0x9   :  { %53 = dma.hbm_to_vmem [thread:$0]  %s49_s21, 16, %s51_s25, [#allocation5]  }
   0xa   :  { %s60_s26 = sshll.u32 %s394_s0, 4  ;;  %s395_s27 = smov 64   ;;  %s61_s26 = int_to_ptr.vmem [resolvable:$true] %s60_s26 }
   0xb   :  { %s396_s28 = smov 4  }
   0xc   :  { %66 = dma.hbm_to_vmem [thread:$0]  %s59_s23, 256, %s61_s26, [#allocation8], %s395_s27, %s395_s27, %s396_s28  }
   0xd   :  { %385 = dma.done.wait [#allocation3], 128  }
   0xe   :  { %386 = vsyncadd [#allocation3], 4294967168 }
   0xf   :  { %387 = dma.done.wait [#allocation5], 32  }
  0x10   :  { %388 = vsyncadd [#allocation5], 4294967264 }
  0x11   :  { %389 = dma.done.wait [#allocation8], 256  }
  0x12   :  { %390 = vsyncadd [#allocation8], 4294967040  ;;  %vm101_vm0 = vcmask 1043456   ;;  %v92_v0 = vld [vmem:[%s487_s1] sm:$0xf]  ;;  %vm97_vm1 = vcmask 64512  }
  0x13   :  { %v90_v1 = vld [vmem:[#allocation2] sm:$0xff]  ;;  %v103_v2 = vsel %vm101_vm0, %v92_v0, 0  ;;  %v272_v4 = vld [vmem:[%s489_s3 + $0x8] sm:$0xff]  ;;  %vm140_vm2 = vcmask 261120   ;;  %v274_v12 = vld [vmem:[#allocation7 + $0x8] sm:$0xff]  ;;  %vm234_vm3 = vcmask 31744  }
  0x14   :  { %v91_v3 = vpack.c.bf16 %v90_v1, %v90_v1  ;;  %112 = vmatpush.bf16.msra.mxu0 %v103_v2  ;;  %150 = vmatpush.bf16.msra.mxu1 %v272_v4  ;;  %v271_v5 = vld [vmem:[%s489_s3] sm:$0xff]  ;;  %v283_v6 = vld [vmem:[#allocation4] ss:$0 sm:$0xff]  ;;  %v273_v13 = vld [vmem:[#allocation7] sm:$0xff] }
  0x15   :  { %188 = vmatpush.bf16.msra.mxu2 %v274_v12  ;;  %v284_v14 = vld [vmem:[#allocation6] ss:$0 sm:$0xff]  ;;  %v275_v21 = vld [vmem:[%s493_s7] sm:$0xff] }
  0x16   :  { %v276_v20 = vld [vmem:[%s493_s7 + $0x8] sm:$0xff]  ;;  %v285_v22 = vld [vmem:[%s492_s6] ss:$0 sm:$0xff] }
  0x17   :  { %243 = vmatmul.msk.bf16.vlgmr.msra.gmra.mxu0 %vm97_vm1, %v91_v3  ;;  %226 = vmatpush.bf16.msra.mxu3 %v276_v20  ;;  %v286_v28 = vld [vmem:[%s494_s8] ss:$0 sm:$0xff] }
  0x18   :  { %151 = vmatpush.bf16.msra.mxu1 %v271_v5 }
  0x19   :  { %189 = vmatpush.bf16.msra.mxu2 %v273_v13 }
  0x1b   :  { %227 = vmatpush.bf16.msra.mxu3 %v275_v21 }
  0x94   :  { %v114_v7 = vpop.f32.mrf.mxu0 }
  0x95   :  { %v115_v8 = vadd.f32 %v283_v6, %v114_v7 }
  0x97   :  { %v118_v9 = vmax.f32 %v115_v8, 0.0 }
  0x99   :  { %v119_v10 = vpack.c.bf16 %v118_v9, %v118_v9 }
  0x9b   :  { %252 = vmatmul.msk.bf16.vlgmr.msra.gmra.mxu1 %vm140_vm2, %v119_v10 }
  0x9c   :  { %v116_v11 = vpop.f32.mrf.mxu0 }
 0x118   :  { %v153_v15 = vpop.f32.mrf.mxu1 }
 0x119   :  { %v154_v16 = vadd.f32 %v284_v14, %v153_v15 }
 0x11b   :  { %v157_v17 = vmax.f32 %v154_v16, 0.0 }
 0x11d   :  { %v158_v18 = vpack.c.bf16 %v157_v17, %v157_v17 }
 0x11f   :  { %261 = vmatmul.msk.bf16.vlgmr.msra.gmra.mxu2 %vm140_vm2, %v158_v18 }
 0x120   :  { %v155_v19 = vpop.f32.mrf.mxu1 }
 0x1a2   :  { %v191_v23 = vpop.f32.mrf.mxu2 }
 0x1a3   :  { %v192_v24 = vadd.f32 %v285_v22, %v191_v23 }
 0x1a5   :  { %v195_v25 = vmax.f32 %v192_v24, 0.0 }
 0x1a7   :  { %v196_v26 = vpack.c.bf16 %v195_v25, %v195_v25 }
 0x1a9   :  { %270 = vmatmul.msk.bf16.vlgmr.msra.gmra.mxu3 %vm140_vm2, %v196_v26 }
 0x1aa   :  { %v193_v27 = vpop.f32.mrf.mxu2 }
 0x22c   :  { %v229_v29 = vpop.f32.mrf.mxu3 }
 0x22d   :  { %v230_v30 = vadd.f32 %v286_v28, %v229_v29 }
 0x22f   :  { %287 = vtanh.f32 %v230_v30 }
 0x234   :  { %v231_v31 = vpop.f32.mrf.mxu3 }
 0x235   :  { %v288_v32 = vpop.eup %287 }
 0x236   :  { %235 = vst.msk [vmem:[%s495_s9] sm:$0xff] %vm234_vm3, %v288_v32 }
 0x237   :  { %240 = vsyncpa [#allocation3], 1 }
 0x238   :  { %241 = vsyncpa [#allocation5], 1 }
 0x239   :  { %242 = vsyncpa [#allocation8], 1 }

</bundles_post_ra>
